<compile_context>
chip_gen: v7x
topology: tpu7x:2x2x1
jax: 0.10.0
libtpu: 0.0.40
codegen_flags: <defaults>
</compile_context>

<pallas_src>
import functools

import jax
import jax.numpy as jnp
from jax import lax
from jax.experimental import pallas as pl
from jax.experimental.pallas import tpu as pltpu

LANES = 128
MAX_TILE_ROWS = 2048  # 2048 x 128 f32 = 1 MiB per input per block


def _focal_loss_kernel(pred_ref, tgt_ref, out_ref, *, gamma, n, tile_rows):
    """One row-tile of focal loss -> (8, 128) partial sum for this block."""
    p = pred_ref[...].astype(jnp.float32)
    t = tgt_ref[...].astype(jnp.float32)

    # Validity mask from the global flat element index (no mask stream in HBM).
    row = lax.broadcasted_iota(jnp.int32, p.shape, 0)
    lane = lax.broadcasted_iota(jnp.int32, p.shape, 1)
    base = pl.program_id(0) * (tile_rows * LANES)
    global_idx = base + row * LANES + lane
    valid = global_idx < n

    # pt = where(target == 1, prediction, 1 - prediction)
    # NOTE: exact float compare matches the PyTorch reference (hard 0/1 labels).
    pt = jnp.where(t == 1.0, p, 1.0 - p)

    one_minus_pt = 1.0 - pt
    g = float(gamma)
    if g == 0.0:
        mod = None  # x ** 0 == 1 (matches torch semantics)
    elif g.is_integer() and 1.0 <= g <= 4.0:
        # Unrolled VPU multiplies; keeps only the log on the EUP.
        mod = one_minus_pt
        for _ in range(int(g) - 1):
            mod = mod * one_minus_pt
    else:
        mod = one_minus_pt ** jnp.float32(g)

    loss = -jnp.log(pt + 1e-6)
    if mod is not None:
        loss = mod * loss
    loss = jnp.where(valid, loss, 0.0)

    # Reduce (tile_rows, 128) -> (8, 128) partial: the (tile_rows//8, 8, 128)
    # view keeps vreg tiles intact, so this is pure vreg-wise VPU adds.
    out_ref[...] = jnp.sum(loss.reshape(tile_rows // 8, 8, LANES), axis=0)


def focal_loss(prediction, target, *, gamma=0, size_average=False,
               max_tile_rows=MAX_TILE_ROWS):
    """Pallas TPU implementation of FocalLoss.forward."""
    assert prediction.shape == target.shape
    n = prediction.size

    pred_flat = jnp.ravel(prediction)
    tgt_flat = jnp.ravel(target)

    rows_needed = -(-n // LANES)
    tile_rows = max(8, min(max_tile_rows, ((rows_needed + 7) // 8) * 8))
    grid_n = max(1, -(-rows_needed // tile_rows))
    rows_pad = grid_n * tile_rows
    n_pad = rows_pad * LANES

    pred2d = jnp.pad(pred_flat, (0, n_pad - n)).reshape(rows_pad, LANES)
    tgt2d = jnp.pad(tgt_flat, (0, n_pad - n)).reshape(rows_pad, LANES)

    tile_spec = pl.BlockSpec((tile_rows, LANES), lambda i: (i, 0))

    partials = pl.pallas_call(
        functools.partial(
            _focal_loss_kernel, gamma=gamma, n=n, tile_rows=tile_rows
        ),
        out_shape=jax.ShapeDtypeStruct((grid_n * 8, LANES), jnp.float32),
        grid_spec=pltpu.PrefetchScalarGridSpec(
            num_scalar_prefetch=0,
            grid=(grid_n,),
            in_specs=[tile_spec, tile_spec],
            out_specs=pl.BlockSpec((8, LANES), lambda i: (i, 0)),
        ),
        compiler_params=pltpu.CompilerParams(
            dimension_semantics=("parallel",)
        ),
    )(pred2d, tgt2d)

    total = jnp.sum(partials)
    if size_average:
        return total / jnp.float32(n)
    return total


def _focal_loss_ref(prediction, target, *, gamma=0, size_average=False):
    prediction = prediction.astype(jnp.float32)
    target = target.astype(jnp.float32)
    pt = jnp.where(target == 1.0, prediction, 1.0 - prediction)
    loss = -1.0 * (1.0 - pt) ** gamma * jnp.log(pt + 1e-6)
    return loss.mean() if size_average else loss.sum()


if __name__ == "__main__":
    key = jax.random.PRNGKey(0)
    k1, k2, k3, k4 = jax.random.split(key, 4)

    # Small shapes consistent with a detection heatmap: (batch, channels, H, W)
    shape = (2, 4, 16, 16)
    prediction = jax.nn.sigmoid(jax.random.normal(k1, shape, dtype=jnp.float32))
    target = (jax.random.uniform(k2, shape) > 0.7).astype(jnp.float32)

    # FocalLoss(gamma=2, size_average=False)
    out = focal_loss(prediction, target, gamma=2, size_average=False)
    out = jax.block_until_ready(out)
    ref = _focal_loss_ref(prediction, target, gamma=2, size_average=False)
    assert jnp.allclose(out, ref, rtol=1e-5, atol=1e-5), (out, ref)

    # gamma=0 (module default), size_average=True path.
    out0 = focal_loss(prediction, target, gamma=0, size_average=True)
    ref0 = _focal_loss_ref(prediction, target, gamma=0, size_average=True)
    assert jnp.allclose(out0, ref0, rtol=1e-5, atol=1e-5), (out0, ref0)

    # Multi-block grid + ragged (non-multiple-of-128) size + in-kernel mask.
    shape2 = (3, 5, 17, 13)
    pred2 = jax.nn.sigmoid(jax.random.normal(k3, shape2, dtype=jnp.float32))
    tgt2 = (jax.random.uniform(k4, shape2) > 0.7).astype(jnp.float32)
    out2 = focal_loss(pred2, tgt2, gamma=2, size_average=False,
                      max_tile_rows=16)  # forces grid_n > 1
    out2 = jax.block_until_ready(out2)
    ref2 = _focal_loss_ref(pred2, tgt2, gamma=2, size_average=False)
    assert jnp.allclose(out2, ref2, rtol=1e-5, atol=1e-5), (out2, ref2)

    print("KERNEL_OK")
</pallas_src>

<mosaic_0001>
module attributes {stable_mosaic.version = 11 : i64} {
  func.func @_focal_loss_kernel(%arg0: i32, %arg1: memref<16x128xf32, #tpu.memory_space<vmem>>, %arg2: memref<16x128xf32, #tpu.memory_space<vmem>>, %arg3: memref<8x128xf32, #tpu.memory_space<vmem>>) attributes {dimension_semantics = [#tpu.dimension_semantics<parallel>], iteration_bounds = array<i64: 1>, scalar_prefetch = 0 : i64, scratch_operands = 0 : i64, tpu.core_type = #tpu.core_type<tc>, window_params = [{transform_indices = @transform_0, window_bounds = array<i64: 16, 128>}, {transform_indices = @transform_1, window_bounds = array<i64: 16, 128>}, {transform_indices = @transform_2, window_bounds = array<i64: 8, 128>}]} {
    %c0 = arith.constant 0 : index
    %c0_0 = arith.constant 0 : index
    %0 = vector.load %arg1[%c0, %c0_0] : memref<16x128xf32, #tpu.memory_space<vmem>>, vector<16x128xf32>
    %c0_1 = arith.constant 0 : index
    %c0_2 = arith.constant 0 : index
    %1 = vector.load %arg2[%c0_1, %c0_2] : memref<16x128xf32, #tpu.memory_space<vmem>>, vector<16x128xf32>
    %2 = tpu.iota {dimensions = array<i32: 0>} : vector<16x128xi32>
    %3 = tpu.iota {dimensions = array<i32: 1>} : vector<16x128xi32>
    %c2048_i32 = arith.constant 2048 : i32
    %4 = arith.muli %arg0, %c2048_i32 : i32
    %c128_i32 = arith.constant 128 : i32
    %5 = vector.broadcast %c128_i32 : i32 to vector<16x128xi32>
    %6 = arith.muli %2, %5 : vector<16x128xi32>
    %7 = vector.broadcast %4 : i32 to vector<16x128xi32>
    %8 = arith.addi %7, %6 : vector<16x128xi32>
    %9 = arith.addi %8, %3 : vector<16x128xi32>
    %c2048_i32_3 = arith.constant 2048 : i32
    %10 = vector.broadcast %c2048_i32_3 : i32 to vector<16x128xi32>
    %11 = arith.cmpi slt, %9, %10 : vector<16x128xi32>
    %cst = arith.constant 1.000000e+00 : f32
    %12 = vector.broadcast %cst : f32 to vector<16x128xf32>
    %13 = arith.cmpf oeq, %1, %12 : vector<16x128xf32>
    %cst_4 = arith.constant 1.000000e+00 : f32
    %14 = vector.broadcast %cst_4 : f32 to vector<16x128xf32>
    %15 = arith.subf %14, %0 : vector<16x128xf32>
    %16 = arith.select %13, %0, %15 : vector<16x128xi1>, vector<16x128xf32>
    %cst_5 = arith.constant 1.000000e+00 : f32
    %17 = vector.broadcast %cst_5 : f32 to vector<16x128xf32>
    %18 = arith.subf %17, %16 : vector<16x128xf32>
    %19 = arith.mulf %18, %18 : vector<16x128xf32>
    %cst_6 = arith.constant 9.99999997E-7 : f32
    %20 = vector.broadcast %cst_6 : f32 to vector<16x128xf32>
    %21 = arith.addf %16, %20 : vector<16x128xf32>
    %22 = math.log %21 : vector<16x128xf32>
    %cst_7 = arith.constant 0.000000e+00 : f32
    %23 = vector.broadcast %cst_7 : f32 to vector<16x128xf32>
    %24 = arith.subf %23, %22 : vector<16x128xf32>
    %25 = arith.mulf %19, %24 : vector<16x128xf32>
    %cst_8 = arith.constant 0.000000e+00 : f32
    %26 = vector.broadcast %cst_8 : f32 to vector<16x128xf32>
    %27 = arith.select %11, %25, %26 : vector<16x128xi1>, vector<16x128xf32>
    %28 = vector.shape_cast %27 : vector<16x128xf32> to vector<2x8x128xf32>
    %cst_9 = arith.constant dense<0.000000e+00> : vector<8x128xf32>
    %29 = vector.multi_reduction <add>, %28, %cst_9 [0] : vector<2x8x128xf32> to vector<8x128xf32>
    %c0_10 = arith.constant 0 : index
    %c0_11 = arith.constant 0 : index
    %30 = vector.load %arg3[%c0_10, %c0_11] : memref<8x128xf32, #tpu.memory_space<vmem>>, vector<8x128xf32>
    tpu.vector_store %arg3[%c0_10, %c0_11], %29 {strides = array<i32>} : memref<8x128xf32, #tpu.memory_space<vmem>>, vector<8x128xf32>,
    return
  }
  func.func @transform_0(%arg0: i32) -> (i32, i32) {
    %c0_i32 = arith.constant 0 : i32
    %c0_i32_0 = arith.constant 0 : i32
    return %arg0, %c0_i32 : i32, i32
  }
  func.func @transform_1(%arg0: i32) -> (i32, i32) {
    %c0_i32 = arith.constant 0 : i32
    %c0_i32_0 = arith.constant 0 : i32
    return %arg0, %c0_i32 : i32, i32
  }
  func.func @transform_2(%arg0: i32) -> (i32, i32) {
    %c0_i32 = arith.constant 0 : i32
    %c0_i32_0 = arith.constant 0 : i32
    return %arg0, %c0_i32 : i32, i32
  }
}

</mosaic_0001>

<bundles_post_ra>
// kernel: tpu_custom_call.1
= control target key start
LH: loop header
LB: loop body
LE: loop exit
PB: predicated region body
PF: predicated region fallthrough
CT: control target
= control target key end

     0   :  { %7 = vsyncpa [#allocation3], 0  ;;  %s236_s0 = inlined_call_operand.hbm [shape: f32[16,128], index: 0, kind: input, shape index: {}]   ;;  %s237_s1 = inlined_call_operand.hbm [shape: f32[16,128], index: 1, kind: input, shape index: {}]   ;;  %s238_s2 = inlined_call_operand.hbm [shape: f32[8,128], index: 2, kind: output, shape index: {}]  }
   0x1   :  { %8 = vsyncpa [#allocation6], 0 }
   0x2   :  { %9 = vsyncpa [#allocation4], 0  ;;  %s180_s9 = smov [#allocation2]   ;;  %s108_s13 = scalar_lea.hbm %s236_s0, 256 }
   0x3   :  { %s15_s10 = sshll.u32 %s180_s9, 4  ;;  %p109_p0 = scmp.ne.s32.totalorder %s236_s0, %s108_s13  ;;  %s16_s10 = int_to_ptr.vmem [resolvable:$true] %s15_s10 }
   0x4   :  { %p112_p1 = scmp.lt.u32.totalorder %s108_s13, %s236_s0 }
   0x6   :  { %p114_p2 = pnand %p112_p1, %p109_p0 }
   0x8   :  { %117 = shalt.err (!%p114_p2)
}
   0x9   :  { %s118_s18 = scalar_lea.vmem %s16_s10, 256  ;;  %p123_p4 = scmp.lt.s32.totalorder %s16_s10, %s16_s10 }
   0xa   :  { %p119_p3 = scmp.ne.s32.totalorder %s16_s10, %s118_s18  ;;  %p124_p5 = scmp.lt.s32.totalorder %s118_s18, %s118_s18 }
   0xc   :  { %p125_p6 = por %p124_p5, %p123_p4 }
   0xe   :  { %p126_p7 = pnand %p125_p6, %p119_p3 }
  0x10   :  { %129 = shalt.err (!%p126_p7)
}
  0x11   :  { %s181_s19 = smov 128   ;;  %s182_s20 = smov 8  }
  0x12   :  { %21 = dma.hbm_to_vmem [thread:$0]  %s236_s0, 256, %s16_s10, [#allocation3], %s181_s19, %s181_s19, %s182_s20  }
  0x13   :  { %s183_s23 = smov [#allocation5]   ;;  %s130_s27 = scalar_lea.hbm %s237_s1, 256 }
  0x14   :  { %s27_s24 = sshll.u32 %s183_s23, 4  ;;  %p131_p8 = scmp.ne.s32.totalorder %s237_s1, %s130_s27  ;;  %s28_s24 = int_to_ptr.vmem [resolvable:$true] %s27_s24 }
  0x15   :  { %p134_p9 = scmp.lt.u32.totalorder %s130_s27, %s237_s1 }
  0x17   :  { %p136_p10 = pnand %p134_p9, %p131_p8 }
  0x19   :  { %139 = shalt.err (!%p136_p10)
}
  0x1a   :  { %s140_s4 = scalar_lea.vmem %s28_s24, 256  ;;  %p145_p12 = scmp.lt.s32.totalorder %s28_s24, %s28_s24 }
  0x1b   :  { %p141_p11 = scmp.ne.s32.totalorder %s28_s24, %s140_s4  ;;  %p146_p13 = scmp.lt.s32.totalorder %s140_s4, %s140_s4 }
  0x1d   :  { %p147_p0 = por %p146_p13, %p145_p12 }
  0x1f   :  { %p148_p1 = pnand %p147_p0, %p141_p11 }
  0x21   :  { %151 = shalt.err (!%p148_p1)
}
  0x22   :  { %33 = dma.hbm_to_vmem [thread:$0]  %s237_s1, 256, %s28_s24, [#allocation6], %s181_s19, %s181_s19, %s182_s20  }
  0x23   :  { %174 = dma.done.wait [#allocation3], 256  }
  0x24   :  { %175 = vsyncadd [#allocation3], 4294967040 }
  0x25   :  { %176 = dma.done.wait [#allocation6], 256  }
  0x26   :  { %177 = vsyncadd [#allocation6], 4294967040  ;;  %v40_v0 = vld [vmem:[#allocation2] sm:$0xff]  ;;  %v41_v1 = vld [vmem:[#allocation2 + $0x8] sm:$0xff]  ;;  %v44_v4 = vlaneseq  ;;  %s184_s1 = smov [#allocation7]  }
  0x27   :  { %v42_v2 = vld [vmem:[#allocation5] sm:$0xff]  ;;  %v43_v3 = vld [vmem:[#allocation5 + $0x8] sm:$0xff]  ;;  %v61_v5 = vsub.f32 1.0, %v40_v0  ;;  %v62_v6 = vsub.f32 1.0, %v41_v1  ;;  %s89_s6 = sshll.u32 %s184_s1, 4  ;;  %s90_s6 = int_to_ptr.vmem [resolvable:$true] %s89_s6 }
  0x28   :  { %vm59_vm0 = vcmp.eq.f32.partialorder %v42_v2, 1.0  ;;  %vm60_vm1 = vcmp.eq.f32.partialorder %v43_v3, 1.0  ;;  %v45_v10 = vshrl.u32 %v44_v4, 7  ;;  %v48_v13 = vand.u32 127, %v44_v4  ;;  %s152_s7 = scalar_lea.vmem %s90_s6, 128  ;;  %p157_p3 = scmp.lt.s32.totalorder %s90_s6, %s90_s6 }
  0x29   :  { %v63_v7 = vsel %vm59_vm0, %v40_v0, %v61_v5  ;;  %v64_v8 = vsel %vm60_vm1, %v41_v1, %v62_v6  ;;  %p153_p2 = scmp.ne.s32.totalorder %s90_s6, %s152_s7  ;;  %p158_p4 = scmp.lt.s32.totalorder %s152_s7, %s152_s7 }
  0x2a   :  { %v69_v9 = vadd.f32 1e-06, %v63_v7  ;;  %v70_v11 = vadd.f32 1e-06, %v64_v8  ;;  %v46_v12 = vadd.s32 8, %v45_v10  ;;  %v50_v14 = vmul.u32 128, %v45_v10 }
  0x2b   :  { %v65_v16 = vsub.f32 1.0, %v63_v7  ;;  %v66_v17 = vsub.f32 1.0, %v64_v8  ;;  %p159_p5 = por %p158_p4, %p157_p3 }
  0x2c   :  { %104 = vlog2.f32 %v69_v9  ;;  %v51_v15 = vmul.u32 128, %v46_v12  ;;  %v55_v19 = vadd.s32 %v50_v14, %v48_v13 }
  0x2d   :  { %106 = vlog2.f32 %v70_v11  ;;  %v67_v22 = vmul.f32 %v65_v16, %v65_v16  ;;  %v68_v24 = vmul.f32 %v66_v17, %v66_v17  ;;  %p160_p6 = pnand %p159_p5, %p153_p2 }
  0x2e   :  { %v56_v21 = vadd.s32 %v51_v15, %v48_v13  ;;  %vm57_vm2 = vcmp.lt.s32.totalorder %v55_v19, 2048 }
  0x30   :  { %vm58_vm3 = vcmp.lt.s32.totalorder %v56_v21, 2048 }
  0x36   :  { %v105_v18 = vpop.eup %104 }
  0x37   :  { %v107_v20 = vpop.eup %106  ;;  %v72_v23 = vmul.f32 0.6931472, %v105_v18 }
  0x38   :  { %v74_v25 = vmul.f32 0.6931472, %v107_v20 }
  0x39   :  { %v75_v26 = vsub.f32 0.0, %v72_v23 }
  0x3a   :  { %v76_v27 = vsub.f32 0.0, %v74_v25 }
  0x3b   :  { %v77_v28 = vmul.f32 %v75_v26, %v67_v22 }
  0x3c   :  { %v78_v29 = vmul.f32 %v76_v27, %v68_v24 }
  0x3d   :  { %v79_v30 = vsel %vm57_vm2, %v77_v28, 0.0 }
  0x3e   :  { %v80_v31 = vsel %vm58_vm3, %v78_v29, 0.0 }
  0x3f   :  { %v81_v32 = vadd.f32 %v80_v31, %v79_v30 }
  0x41   :  { %82 = vst [vmem:[#allocation7] sm:$0xff] %v81_v32 }
  0x42   :  { %163 = shalt.err (!%p160_p6)
}
  0x43   :  { %s164_s10 = scalar_lea.hbm %s238_s2, 128 }
  0x44   :  { %p165_p7 = scmp.ne.s32.totalorder %s238_s2, %s164_s10  ;;  %p168_p8 = scmp.lt.u32.totalorder %s164_s10, %s238_s2 }
  0x46   :  { %p170_p9 = pnand %p168_p8, %p165_p7 }
  0x48   :  { %173 = shalt.err (!%p170_p9)
}
  0x49   :  { %92 = dma.vmem_to_hbm [thread:$0]  %s90_s6, 128, %s238_s2, [#allocation4]  }
  0x4a   :  { %178 = dma.done.wait [#allocation4], 128  }
  0x4b   :  { %179 = vsyncadd [#allocation4], 4294967168 }
  0x4c   :  { %96 = vsyncpa [#allocation3], 1 }
  0x4d   :  { %97 = vsyncpa [#allocation6], 1 }
  0x4e   :  { %98 = vsyncpa [#allocation4], 1 }

</bundles_post_ra>
